<compile_context>
chip_gen: v6e
topology: v6e:2x2x1
jax: 0.10.0
libtpu: 0.0.40
codegen_flags: <defaults>
</compile_context>

<pallas_src>
import functools

import jax
import jax.numpy as jnp
from jax.experimental import pallas as pl
from jax.experimental.pallas import tpu as pltpu

_LANE = 128      # lane width: last dim should be a multiple of this
_SUBLANE = 8     # sublane: second-to-last dim multiple (f32)


def _round_up(x, m):
    return ((x + m - 1) // m) * m


# --------------------------------------------------------------------------
# Kernel: fused Linear(+ReLU) stack on one (tile_m, K_pad) row tile.
# --------------------------------------------------------------------------
def _fused_mlp_kernel(x_ref, *refs, num_layers, compute_dtype):
    # refs = (w_0..w_{L-1}, b_0..b_{L-1}, o_ref)
    w_refs = refs[:num_layers]
    b_refs = refs[num_layers:2 * num_layers]
    o_ref = refs[2 * num_layers]

    h = x_ref[...]                                   # (tile_m, K_pad) f32
    for i in range(num_layers):                      # unrolled at trace time
        y = jnp.dot(h.astype(compute_dtype),         # bf16 MXU inputs
                    w_refs[i][...],                  # (K_pad, N_pad) bf16
                    preferred_element_type=jnp.float32)
        y = y + b_refs[i][...]                       # f32 epilogue
        if i < num_layers - 1:
            y = jnp.maximum(y, 0.0)                  # ReLU in f32
        h = y
    o_ref[...] = h.astype(o_ref.dtype)               # single lane-dense store


# --------------------------------------------------------------------------
# One-time parameter preparation (transpose + pad + cast) — outside forward.
# --------------------------------------------------------------------------
def prepare_mlp_params(params, compute_dtype=jnp.bfloat16):
    """params: list of (w (out,in) f32, b (out,) f32) PyTorch-style tensors.

    Returns list of (w_t (K_pad, N_pad) compute_dtype, b (1, N_pad) f32),
    zero-padded so every feature dim is a multiple of 128.
    """
    prepared = []
    for w, b in params:
        n_out, n_in = w.shape
        k_pad = _round_up(n_in, _LANE)
        n_pad = _round_up(n_out, _LANE)
        w_t = jnp.zeros((k_pad, n_pad), compute_dtype)
        w_t = w_t.at[:n_in, :n_out].set(jnp.transpose(w).astype(compute_dtype))
        b_p = jnp.zeros((1, n_pad), jnp.float32)
        b_p = b_p.at[:, :n_out].set(b.astype(jnp.float32).reshape(1, -1))
        prepared.append((w_t, b_p))
    return prepared


# --------------------------------------------------------------------------
# Forward pass: one pallas_call for the whole MLP.
# --------------------------------------------------------------------------
def mlp_forward(x, prepared_params, output_dim,
                *, compute_dtype=jnp.bfloat16, tile_m=None):
    orig_shape = x.shape
    in_dim = orig_shape[-1]
    x2d = x.reshape(-1, in_dim).astype(jnp.float32)
    M = x2d.shape[0]

    num_layers = len(prepared_params)
    w_list = [w for w, _ in prepared_params]
    b_list = [b for _, b in prepared_params]
    K_pad = w_list[0].shape[0]
    N_out_pad = w_list[-1].shape[1]

    # Tile choice: big tiles for large M (>=2 grid steps -> both v7x cores),
    # one 8-aligned tile for small demo-sized M. Never requires M % tile_m.
    if tile_m is None:
        tile_m = 256 if M >= 512 else _round_up(M, _SUBLANE)
    M_pad = _round_up(M, tile_m)

    # Zero-pad rows (M) and the input feature dim (K) once in the wrapper.
    x_padded = jnp.zeros((M_pad, K_pad), jnp.float32).at[:M, :in_dim].set(x2d)

    kernel = functools.partial(_fused_mlp_kernel,
                               num_layers=num_layers,
                               compute_dtype=compute_dtype)

    in_specs = [pl.BlockSpec((tile_m, K_pad), lambda i: (i, 0))]
    in_specs += [pl.BlockSpec(w.shape, lambda i: (0, 0)) for w in w_list]
    in_specs += [pl.BlockSpec(b.shape, lambda i: (0, 0)) for b in b_list]

    out = pl.pallas_call(
        kernel,
        out_shape=jax.ShapeDtypeStruct((M_pad, N_out_pad), jnp.float32),
        grid_spec=pltpu.PrefetchScalarGridSpec(
            num_scalar_prefetch=0,
            grid=(M_pad // tile_m,),
            in_specs=in_specs,
            out_specs=pl.BlockSpec((tile_m, N_out_pad), lambda i: (i, 0)),
        ),
        compiler_params=pltpu.CompilerParams(
            dimension_semantics=("parallel",),
        ),
    )(x_padded, *w_list, *b_list)

    out = out[:M, :output_dim]
    return out.reshape(orig_shape[:-1] + (output_dim,))


# --------------------------------------------------------------------------
# Params / references
# --------------------------------------------------------------------------
def init_mlp_params(key, input_dim, hidden_dim, output_dim, num_layers):
    """Deterministic params matching nn.Linear: weight (out,in), bias (out,)."""
    h = [hidden_dim] * (num_layers - 1)
    dims_in = [input_dim] + h
    dims_out = h + [output_dim]
    params = []
    for n_in, n_out in zip(dims_in, dims_out):
        key, kw, kb = jax.random.split(key, 3)
        bound = 1.0 / jnp.sqrt(jnp.float32(n_in))
        w = jax.random.uniform(kw, (n_out, n_in), jnp.float32, -bound, bound)
        b = jax.random.uniform(kb, (n_out,), jnp.float32, -bound, bound)
        params.append((w, b))
    return params


def mlp_reference(x, params, compute_dtype=jnp.float32):
    """Plain-JAX reference. compute_dtype mirrors the kernel's MXU input dtype."""
    num_layers = len(params)
    for i, (w, b) in enumerate(params):
        y = jnp.dot(x.astype(compute_dtype),
                    jnp.transpose(w).astype(compute_dtype),
                    preferred_element_type=jnp.float32) + b
        x = jnp.maximum(y, 0.0) if i < num_layers - 1 else y
    return x


if __name__ == "__main__":
    key = jax.random.PRNGKey(0)

    # Shapes consistent with DETR's bbox MLP head: (batch, num_queries, dim)
    batch, num_queries = 2, 8
    input_dim, hidden_dim, output_dim, num_layers = 32, 32, 4, 3

    kx, kp = jax.random.split(key)
    x = jax.random.normal(kx, (batch, num_queries, input_dim), jnp.float32)
    params = init_mlp_params(kp, input_dim, hidden_dim, output_dim, num_layers)

    # Prepare (transpose / pad / cast) weights ONCE, outside the forward pass.
    prepared = prepare_mlp_params(params, compute_dtype=jnp.bfloat16)

    fwd = jax.jit(functools.partial(mlp_forward,
                                    output_dim=output_dim,
                                    compute_dtype=jnp.bfloat16))
    out = jax.block_until_ready(fwd(x, prepared))

    assert out.shape == (batch, num_queries, output_dim)

    # Tight check against a bf16-matmul / f32-accumulate matched reference.
    ref_bf16 = mlp_reference(x, params, compute_dtype=jnp.bfloat16)
    assert jnp.allclose(out, ref_bf16, atol=1e-4, rtol=1e-4), \
        "mismatch vs bf16-matched reference"

    # Loose check against the full-f32 reference (bf16 rounding tolerance).
    ref_f32 = mlp_reference(x, params, compute_dtype=jnp.float32)
    assert jnp.allclose(out, ref_f32, atol=5e-2, rtol=5e-2), \
        "mismatch vs f32 reference beyond bf16 tolerance"

    print("KERNEL_OK")
</pallas_src>

<mosaic_0001>
module attributes {stable_mosaic.version = 11 : i64} {
  func.func @_fused_mlp_kernel(%arg0: i32, %arg1: memref<16x128xf32, #tpu.memory_space<vmem>>, %arg2: memref<128x128xbf16, #tpu.memory_space<vmem>>, %arg3: memref<128x128xbf16, #tpu.memory_space<vmem>>, %arg4: memref<128x128xbf16, #tpu.memory_space<vmem>>, %arg5: memref<1x128xf32, #tpu.memory_space<vmem>>, %arg6: memref<1x128xf32, #tpu.memory_space<vmem>>, %arg7: memref<1x128xf32, #tpu.memory_space<vmem>>, %arg8: memref<16x128xf32, #tpu.memory_space<vmem>>) attributes {dimension_semantics = [#tpu.dimension_semantics<parallel>], iteration_bounds = array<i64: 1>, scalar_prefetch = 0 : i64, scratch_operands = 0 : i64, tpu.core_type = #tpu.core_type<tc>, window_params = [{transform_indices = @transform_0, window_bounds = array<i64: 16, 128>}, {pipeline_mode = #tpu.pipeline_mode<synchronous>, transform_indices = @transform_1, window_bounds = array<i64: 128, 128>}, {pipeline_mode = #tpu.pipeline_mode<synchronous>, transform_indices = @transform_2, window_bounds = array<i64: 128, 128>}, {pipeline_mode = #tpu.pipeline_mode<synchronous>, transform_indices = @transform_3, window_bounds = array<i64: 128, 128>}, {pipeline_mode = #tpu.pipeline_mode<synchronous>, transform_indices = @transform_4, window_bounds = array<i64: 1, 128>}, {pipeline_mode = #tpu.pipeline_mode<synchronous>, transform_indices = @transform_5, window_bounds = array<i64: 1, 128>}, {pipeline_mode = #tpu.pipeline_mode<synchronous>, transform_indices = @transform_6, window_bounds = array<i64: 1, 128>}, {transform_indices = @transform_7, window_bounds = array<i64: 16, 128>}]} {
    %c0 = arith.constant 0 : index
    %c0_0 = arith.constant 0 : index
    %0 = vector.load %arg1[%c0, %c0_0] : memref<16x128xf32, #tpu.memory_space<vmem>>, vector<16x128xf32>
    %1 = arith.truncf %0 : vector<16x128xf32> to vector<16x128xbf16>
    %c0_1 = arith.constant 0 : index
    %c0_2 = arith.constant 0 : index
    %2 = vector.load %arg2[%c0_1, %c0_2] : memref<128x128xbf16, #tpu.memory_space<vmem>>, vector<128x128xbf16>
    %cst = arith.constant dense<0.000000e+00> : vector<16x128xf32>
    %3 = tpu.matmul %1, %2, %cst {dimension_numbers = #tpu.dot_dimension_numbers<[1], [0], [0], [1], [0, 0, 1, 1], [], []>} : vector<16x128xbf16>, vector<128x128xbf16>, vector<16x128xf32> -> vector<16x128xf32>
    %c0_3 = arith.constant 0 : index
    %c0_4 = arith.constant 0 : index
    %4 = vector.load %arg5[%c0_3, %c0_4] : memref<1x128xf32, #tpu.memory_space<vmem>>, vector<1x128xf32>
    %5 = vector.broadcast %4 : vector<1x128xf32> to vector<16x128xf32>
    %6 = arith.addf %3, %5 : vector<16x128xf32>
    %cst_5 = arith.constant 0.000000e+00 : f32
    %7 = vector.broadcast %cst_5 : f32 to vector<16x128xf32>
    %8 = arith.maximumf %6, %7 : vector<16x128xf32>
    %9 = arith.truncf %8 : vector<16x128xf32> to vector<16x128xbf16>
    %c0_6 = arith.constant 0 : index
    %c0_7 = arith.constant 0 : index
    %10 = vector.load %arg3[%c0_6, %c0_7] : memref<128x128xbf16, #tpu.memory_space<vmem>>, vector<128x128xbf16>
    %cst_8 = arith.constant dense<0.000000e+00> : vector<16x128xf32>
    %11 = tpu.matmul %9, %10, %cst_8 {dimension_numbers = #tpu.dot_dimension_numbers<[1], [0], [0], [1], [0, 0, 1, 1], [], []>} : vector<16x128xbf16>, vector<128x128xbf16>, vector<16x128xf32> -> vector<16x128xf32>
    %c0_9 = arith.constant 0 : index
    %c0_10 = arith.constant 0 : index
    %12 = vector.load %arg6[%c0_9, %c0_10] : memref<1x128xf32, #tpu.memory_space<vmem>>, vector<1x128xf32>
    %13 = vector.broadcast %12 : vector<1x128xf32> to vector<16x128xf32>
    %14 = arith.addf %11, %13 : vector<16x128xf32>
    %cst_11 = arith.constant 0.000000e+00 : f32
    %15 = vector.broadcast %cst_11 : f32 to vector<16x128xf32>
    %16 = arith.maximumf %14, %15 : vector<16x128xf32>
    %17 = arith.truncf %16 : vector<16x128xf32> to vector<16x128xbf16>
    %c0_12 = arith.constant 0 : index
    %c0_13 = arith.constant 0 : index
    %18 = vector.load %arg4[%c0_12, %c0_13] : memref<128x128xbf16, #tpu.memory_space<vmem>>, vector<128x128xbf16>
    %cst_14 = arith.constant dense<0.000000e+00> : vector<16x128xf32>
    %19 = tpu.matmul %17, %18, %cst_14 {dimension_numbers = #tpu.dot_dimension_numbers<[1], [0], [0], [1], [0, 0, 1, 1], [], []>} : vector<16x128xbf16>, vector<128x128xbf16>, vector<16x128xf32> -> vector<16x128xf32>
    %c0_15 = arith.constant 0 : index
    %c0_16 = arith.constant 0 : index
    %20 = vector.load %arg7[%c0_15, %c0_16] : memref<1x128xf32, #tpu.memory_space<vmem>>, vector<1x128xf32>
    %21 = vector.broadcast %20 : vector<1x128xf32> to vector<16x128xf32>
    %22 = arith.addf %19, %21 : vector<16x128xf32>
    %c0_17 = arith.constant 0 : index
    %c0_18 = arith.constant 0 : index
    %23 = vector.load %arg8[%c0_17, %c0_18] : memref<16x128xf32, #tpu.memory_space<vmem>>, vector<16x128xf32>
    tpu.vector_store %arg8[%c0_17, %c0_18], %22 {strides = array<i32>} : memref<16x128xf32, #tpu.memory_space<vmem>>, vector<16x128xf32>,
    return
  }
  func.func @transform_0(%arg0: i32) -> (i32, i32) {
    %c0_i32 = arith.constant 0 : i32
    %c0_i32_0 = arith.constant 0 : i32
    return %arg0, %c0_i32 : i32, i32
  }
  func.func @transform_1(%arg0: i32) -> (i32, i32) {
    %c0_i32 = arith.constant 0 : i32
    %c0_i32_0 = arith.constant 0 : i32
    %c0_i32_1 = arith.constant 0 : i32
    return %c0_i32, %c0_i32_0 : i32, i32
  }
  func.func @transform_2(%arg0: i32) -> (i32, i32) {
    %c0_i32 = arith.constant 0 : i32
    %c0_i32_0 = arith.constant 0 : i32
    %c0_i32_1 = arith.constant 0 : i32
    return %c0_i32, %c0_i32_0 : i32, i32
  }
  func.func @transform_3(%arg0: i32) -> (i32, i32) {
    %c0_i32 = arith.constant 0 : i32
    %c0_i32_0 = arith.constant 0 : i32
    %c0_i32_1 = arith.constant 0 : i32
    return %c0_i32, %c0_i32_0 : i32, i32
  }
  func.func @transform_4(%arg0: i32) -> (i32, i32) {
    %c0_i32 = arith.constant 0 : i32
    %c0_i32_0 = arith.constant 0 : i32
    %c0_i32_1 = arith.constant 0 : i32
    return %c0_i32, %c0_i32_0 : i32, i32
  }
  func.func @transform_5(%arg0: i32) -> (i32, i32) {
    %c0_i32 = arith.constant 0 : i32
    %c0_i32_0 = arith.constant 0 : i32
    %c0_i32_1 = arith.constant 0 : i32
    return %c0_i32, %c0_i32_0 : i32, i32
  }
  func.func @transform_6(%arg0: i32) -> (i32, i32) {
    %c0_i32 = arith.constant 0 : i32
    %c0_i32_0 = arith.constant 0 : i32
    %c0_i32_1 = arith.constant 0 : i32
    return %c0_i32, %c0_i32_0 : i32, i32
  }
  func.func @transform_7(%arg0: i32) -> (i32, i32) {
    %c0_i32 = arith.constant 0 : i32
    %c0_i32_0 = arith.constant 0 : i32
    return %arg0, %c0_i32 : i32, i32
  }
}

</mosaic_0001>

<bundles_post_ra>
// kernel: mlp_forward.1
= control target key start
LH: loop header
LB: loop body
LE: loop exit
PB: predicated region body
PF: predicated region fallthrough
CT: control target
= control target key end

     0   :  { %12 = vsyncpa [#allocation3], 0  ;;  %s723_s0 = inlined_call_operand.vmem [shape: f32[16,128], index: 0, kind: input, shape index: {}]   ;;  %s724_s1 = inlined_call_operand.vmem [shape: bf16[128,128], index: 1, kind: input, shape index: {}]   ;;  %s725_s2 = inlined_call_operand.hbm [shape: bf16[128,128], index: 2, kind: input, shape index: {}]   ;;  %s726_s3 = inlined_call_operand.hbm [shape: bf16[128,128], index: 3, kind: input, shape index: {}]   ;;  %s727_s4 = inlined_call_operand.vmem [shape: f32[1,128], index: 4, kind: input, shape index: {}]   ;;  %s728_s5 = inlined_call_operand.vmem [shape: f32[1,128], index: 5, kind: input, shape index: {}]   ;;  %s729_s6 = inlined_call_operand.vmem [shape: f32[1,128], index: 6, kind: input, shape index: {}]   ;;  %s730_s7 = inlined_call_operand.vmem [shape: f32[16,128], index: 7, kind: output, shape index: {}]  }
   0x1   :  { %13 = vsyncpa [#allocation5], 0  ;;  %s596_s24 = smov [#allocation2]  }
   0x2   :  { %s23_s25 = sshll.u32 %s596_s24, 4  ;;  %s24_s25 = int_to_ptr.vmem [resolvable:$true] %s23_s25 }
   0x3   :  { %s560_s26 = scalar_lea.vmem %s24_s25, 1024  ;;  %p565_p1 = scmp.lt.s32.totalorder %s24_s25, %s24_s25 }
   0x4   :  { %p561_p0 = scmp.ne.s32.totalorder %s24_s25, %s560_s26  ;;  %p566_p2 = scmp.lt.s32.totalorder %s560_s26, %s560_s26 }
   0x6   :  { %p567_p3 = por %p566_p2, %p565_p1 }
   0x8   :  { %p568_p4 = pnand %p567_p3, %p561_p0 }
   0xa   :  { %571 = shalt.err (!%p568_p4)
}
   0xb   :  { %s597_s27 = smov 64   ;;  %s598_s28 = smov 4  }
   0xc   :  { %29 = dma.hbm_to_vmem [thread:$0]  %s725_s2, 1024, %s24_s25, [#allocation3], %s597_s27, %s597_s27, %s598_s28  }
   0xd   :  { %s599_s8 = smov [#allocation4]  }
   0xe   :  { %s35_s9 = sshll.u32 %s599_s8, 4  ;;  %s36_s9 = int_to_ptr.vmem [resolvable:$true] %s35_s9 }
   0xf   :  { %s580_s10 = scalar_lea.vmem %s36_s9, 1024  ;;  %p585_p6 = scmp.lt.s32.totalorder %s36_s9, %s36_s9 }
  0x10   :  { %p581_p5 = scmp.ne.s32.totalorder %s36_s9, %s580_s10  ;;  %p586_p7 = scmp.lt.s32.totalorder %s580_s10, %s580_s10 }
  0x12   :  { %p587_p8 = por %p586_p7, %p585_p6 }
  0x14   :  { %p588_p9 = pnand %p587_p8, %p581_p5 }
  0x16   :  { %591 = shalt.err (!%p588_p9)
}
  0x17   :  { %41 = dma.hbm_to_vmem [thread:$0]  %s726_s3, 1024, %s36_s9, [#allocation5], %s597_s27, %s597_s27, %s598_s28  }
  0x18   :  { %592 = dma.done.wait [#allocation3], 1024  }
  0x19   :  { %593 = vsyncadd [#allocation3], 4294966272 }
  0x1a   :  { %594 = dma.done.wait [#allocation5], 1024  }
  0x1b   :  { %595 = vsyncadd [#allocation5], 4294966272  ;;  %v600_v0 = vmov 0.0   ;;  %vm601_vm0 = vmmov 0   ;;  %v528_v1 = vld [vmem:[%s724_s1 + $0x38] sm:$0xff]   ;;  %v529_v2 = vld [vmem:[%s724_s1 + $0x30] sm:$0xff]  }
  0x1c   :  { %462 = vmatprep.subr.bf16.mxu0 %v600_v0  ;;  %478 = vmatprep.mubr.msk.bf16.mxu0 %vm601_vm0, %v600_v0  ;;  %v530_v3 = vld [vmem:[%s724_s1 + $0x28] sm:$0xff]   ;;  %v536_v4 = vld [vmem:[#allocation2 + $0x38] sm:$0xff]   ;;  %v531_v5 = vld [vmem:[%s724_s1 + $0x20] sm:$0xff]  }
  0x1d   :  { %482 = vmatprep.subr.bf16.mxu1 %v600_v0  ;;  %498 = vmatprep.mubr.msk.bf16.mxu1 %vm601_vm0, %v600_v0  ;;  %v537_v6 = vld [vmem:[#allocation2 + $0x30] sm:$0xff]   ;;  %v532_v7 = vld [vmem:[%s724_s1 + $0x18] sm:$0xff]   ;;  %v538_v8 = vld [vmem:[#allocation2 + $0x28] sm:$0xff]  }
  0x1e   :  { %463 = vmatpush3.bf16.msra.mxu0 %v528_v1  ;;  %483 = vmatpush3.bf16.msra.mxu1 %v536_v4  ;;  %v533_v9 = vld [vmem:[%s724_s1 + $0x10] sm:$0xff]   ;;  %v539_v10 = vld [vmem:[#allocation2 + $0x20] sm:$0xff]   ;;  %v534_v11 = vld [vmem:[%s724_s1 + $0x8] sm:$0xff]  }
  0x1f   :  { %464 = vmatprep.subr.bf16.mxu0 %v600_v0  ;;  %484 = vmatprep.subr.bf16.mxu1 %v600_v0  ;;  %v540_v12 = vld [vmem:[#allocation2 + $0x18] sm:$0xff]   ;;  %v535_v13 = vld [vmem:[%s724_s1] sm:$0xff]   ;;  %v56_v15 = vld [vmem:[%s723_s0 + $0x8] sm:$0xff] }
  0x20   :  { %v55_v14 = vld [vmem:[%s723_s0] sm:$0xff]  ;;  %v541_v17 = vld [vmem:[#allocation2 + $0x10] sm:$0xff]   ;;  %v542_v18 = vld [vmem:[#allocation2 + $0x8] sm:$0xff]  }
  0x21   :  { %v57_v16 = vpack.c.bf16 %v56_v15, %v55_v14  ;;  %v543_v19 = vld [vmem:[#allocation2] sm:$0xff]   ;;  %v544_v20 = vld [vmem:[#allocation4 + $0x38] sm:$0xff]   ;;  %v545_v21 = vld [vmem:[#allocation4 + $0x30] sm:$0xff]  }
  0x22   :  { %465 = vmatpush3.bf16.msra.mxu0 %v529_v2  ;;  %485 = vmatpush3.bf16.msra.mxu1 %v537_v6  ;;  %v546_v22 = vld [vmem:[#allocation4 + $0x28] sm:$0xff]   ;;  %v547_v23 = vld [vmem:[#allocation4 + $0x20] sm:$0xff]   ;;  %v548_v24 = vld [vmem:[#allocation4 + $0x18] sm:$0xff]  }
  0x23   :  { %466 = vmatprep.subr.bf16.mxu0 %v600_v0  ;;  %486 = vmatprep.subr.bf16.mxu1 %v600_v0  ;;  %v408_v25 = vld [vmem:[%s727_s4] ss:$0 sm:$0xff]  ;;  %v549_v35 = vld [vmem:[#allocation4 + $0x10] sm:$0xff]   ;;  %v550_v36 = vld [vmem:[#allocation4 + $0x8] sm:$0xff]  }
  0x24   :  { %v551_v37 = vld [vmem:[#allocation4] sm:$0xff]  }
  0x25   :  { %v417_v38 = vld [vmem:[%s728_s5] ss:$0 sm:$0xff] }
  0x26   :  { %467 = vmatpush3.bf16.msra.mxu0 %v530_v3  ;;  %487 = vmatpush3.bf16.msra.mxu1 %v538_v8  ;;  %v426_v48 = vld [vmem:[%s729_s6] ss:$0 sm:$0xff] }
  0x27   :  { %468 = vmatprep.subr.bf16.mxu0 %v600_v0  ;;  %488 = vmatprep.subr.bf16.mxu1 %v600_v0 }
  0x2a   :  { %469 = vmatpush3.bf16.msra.mxu0 %v531_v5  ;;  %489 = vmatpush3.bf16.msra.mxu1 %v539_v10 }
  0x2b   :  { %470 = vmatprep.subr.bf16.mxu0 %v600_v0  ;;  %490 = vmatprep.subr.bf16.mxu1 %v600_v0 }
  0x2e   :  { %471 = vmatpush3.bf16.msra.mxu0 %v532_v7  ;;  %491 = vmatpush3.bf16.msra.mxu1 %v540_v12 }
  0x2f   :  { %472 = vmatprep.subr.bf16.mxu0 %v600_v0  ;;  %492 = vmatprep.subr.bf16.mxu1 %v600_v0 }
  0x32   :  { %473 = vmatpush3.bf16.msra.mxu0 %v533_v9  ;;  %493 = vmatpush3.bf16.msra.mxu1 %v541_v17 }
  0x33   :  { %474 = vmatprep.subr.bf16.mxu0 %v600_v0  ;;  %494 = vmatprep.subr.bf16.mxu1 %v600_v0 }
  0x36   :  { %475 = vmatpush3.bf16.msra.mxu0 %v534_v11  ;;  %495 = vmatpush3.bf16.msra.mxu1 %v542_v18 }
  0x37   :  { %476 = vmatprep.subr.bf16.mxu0 %v600_v0  ;;  %496 = vmatprep.subr.bf16.mxu1 %v600_v0 }
  0x3a   :  { %477 = vmatpush3.bf16.msra.mxu0 %v535_v13  ;;  %497 = vmatpush3.bf16.msra.mxu1 %v543_v19 }
  0x3b   :  { %502 = vmatprep.subr.bf16.mxu0 %v600_v0 }
  0x3d   :  { %479 = vmatmul.mubr.bf16.vlgmr.msra.gmra.mxu0 %v57_v16 }
  0x3e   :  { %518 = vmatprep.mubr.msk.bf16.mxu0 %vm601_vm0, %v600_v0  ;;  %503 = vmatpush3.bf16.msra.mxu0 %v544_v20 }
  0x3f   :  { %504 = vmatprep.subr.bf16.mxu0 %v600_v0 }
  0x42   :  { %505 = vmatpush3.bf16.msra.mxu0 %v545_v21 }
  0x43   :  { %506 = vmatprep.subr.bf16.mxu0 %v600_v0 }
  0x46   :  { %507 = vmatpush3.bf16.msra.mxu0 %v546_v22 }
  0x47   :  { %508 = vmatprep.subr.bf16.mxu0 %v600_v0 }
  0x4a   :  { %509 = vmatpush3.bf16.msra.mxu0 %v547_v23 }
  0x4b   :  { %510 = vmatprep.subr.bf16.mxu0 %v600_v0 }
  0x4e   :  { %511 = vmatpush3.bf16.msra.mxu0 %v548_v24 }
  0x4f   :  { %512 = vmatprep.subr.bf16.mxu0 %v600_v0 }
  0x52   :  { %513 = vmatpush3.bf16.msra.mxu0 %v549_v35 }
  0x53   :  { %514 = vmatprep.subr.bf16.mxu0 %v600_v0 }
  0x56   :  { %515 = vmatpush3.bf16.msra.mxu0 %v550_v36 }
  0x57   :  { %516 = vmatprep.subr.bf16.mxu0 %v600_v0 }
  0x5a   :  { %517 = vmatpush3.bf16.msra.mxu0 %v551_v37 }
  0xfd   :  { %v163_v26 = vpop.f32.mrf.mxu0 }
  0xfe   :  { %v164_v28 = vadd.f32 %v408_v25, %v163_v26 }
  0xff   :  { %v480_v27 = vpop.f32.mrf.mxu0 }
 0x100   :  { %v170_v32 = vmax.f32 %v164_v28, 0.0 }
 0x101   :  { %v166_v29 = vpop.f32.mrf.mxu0 }
 0x102   :  { %v167_v30 = vadd.f32 %v408_v25, %v166_v29 }
 0x103   :  { %v481_v31 = vpop.f32.mrf.mxu0 }
 0x104   :  { %v171_v33 = vmax.f32 %v167_v30, 0.0 }
 0x106   :  { %v172_v34 = vpack.c.bf16 %v171_v33, %v170_v32 }
 0x108   :  { %499 = vmatmul.mubr.bf16.vlgmr.msra.gmra.mxu1 %v172_v34 }
 0x1c8   :  { %v278_v39 = vpop.f32.mrf.mxu1 }
 0x1c9   :  { %v279_v41 = vadd.f32 %v417_v38, %v278_v39 }
 0x1ca   :  { %v500_v40 = vpop.f32.mrf.mxu1 }
 0x1cb   :  { %v285_v45 = vmax.f32 %v279_v41, 0.0 }
 0x1cc   :  { %v281_v42 = vpop.f32.mrf.mxu1 }
 0x1cd   :  { %v282_v43 = vadd.f32 %v417_v38, %v281_v42 }
 0x1ce   :  { %v501_v44 = vpop.f32.mrf.mxu1 }
 0x1cf   :  { %v286_v46 = vmax.f32 %v282_v43, 0.0 }
 0x1d1   :  { %v287_v47 = vpack.c.bf16 %v286_v46, %v285_v45 }
 0x1d3   :  { %519 = vmatmul.mubr.bf16.vlgmr.msra.gmra.mxu0 %v287_v47 }
 0x293   :  { %v393_v49 = vpop.f32.mrf.mxu0 }
 0x294   :  { %v394_v50 = vadd.f32 %v426_v48, %v393_v49 }
 0x295   :  { %v520_v51 = vpop.f32.mrf.mxu0 }
 0x296   :  { %400 = vst [vmem:[%s730_s7] sm:$0xff] %v394_v50 }
 0x297   :  { %v396_v52 = vpop.f32.mrf.mxu0 }
 0x298   :  { %v397_v53 = vadd.f32 %v426_v48, %v396_v52 }
 0x299   :  { %v521_v54 = vpop.f32.mrf.mxu0 }
 0x29a   :  { %401 = vst [vmem:[%s730_s7 + $0x8] sm:$0xff] %v397_v53 }
 0x29b   :  { %406 = vsyncpa [#allocation3], 1 }
 0x29c   :  { %407 = vsyncpa [#allocation5], 1 }

</bundles_post_ra>
